<compile_context>
chip_gen: v7x
topology: tpu7x:2x2x1
jax: 0.10.0
libtpu: 0.0.40
codegen_flags: <defaults>
</compile_context>

<pallas_src>
import jax
import jax.numpy as jnp
from jax.experimental import pallas as pl
from jax.experimental.pallas import tpu as pltpu


TILE_B = 128  # lane-dense batch tile (multiple of 128); bump to 8192+ for large B


def _sigmoid(z):
    # sigmoid(z) = 0.5 * (tanh(z/2) + 1): one EUP push instead of exp + recip.
    return 0.5 * (jnp.tanh(0.5 * z) + 1.0)


def mlp_kernel(x_ref, w1_ref, b1_ref, w2_ref, b2_ref, w3_ref, b3_ref, o_ref):
    x = x_ref[...]  # (8, TILE_B), batch on lanes

    h1 = jnp.dot(w1_ref[...], x, preferred_element_type=jnp.float32) + b1_ref[...]
    h1 = _sigmoid(h1)                                                  # (6, TILE_B)

    h2 = jnp.dot(w2_ref[...], h1, preferred_element_type=jnp.float32) + b2_ref[...]
    h2 = _sigmoid(h2)                                                  # (4, TILE_B)

    h3 = jnp.dot(w3_ref[...], h2, preferred_element_type=jnp.float32) + b3_ref[...]
    o_ref[...] = _sigmoid(h3).astype(o_ref.dtype)                      # (1, TILE_B)


def mlp_forward(x, params):
    """x: (B, 8) float32 (PyTorch-style layout).  Returns (B, 1)."""
    w1, b1, w2, b2, w3, b3 = params
    B = x.shape[0]

    # Pad batch up to a multiple of TILE_B and transpose to lane-dense (8, B_pad).
    n_tiles = pl.cdiv(B, TILE_B)
    B_pad = n_tiles * TILE_B
    xt = jnp.zeros((8, B_pad), x.dtype).at[:, :B].set(x.T)

    def resident(arr):
        # Full-array block, always block (0, 0): stays in VMEM across the grid.
        return pl.BlockSpec(arr.shape, lambda i: (0, 0))

    out_t = pl.pallas_call(
        mlp_kernel,
        out_shape=jax.ShapeDtypeStruct((1, B_pad), x.dtype),
        grid_spec=pl.GridSpec(
            grid=(n_tiles,),
            in_specs=[
                pl.BlockSpec((8, TILE_B), lambda i: (0, i)),  # x^T tile
                resident(w1), resident(b1),
                resident(w2), resident(b2),
                resident(w3), resident(b3),
            ],
            out_specs=pl.BlockSpec((1, TILE_B), lambda i: (0, i)),
        ),
        compiler_params=pltpu.CompilerParams(
            dimension_semantics=("parallel",),
            vmem_limit_bytes=64 * 1024 * 1024,
        ),
    )(xt, w1, b1, w2, b2, w3, b3)

    return out_t[:, :B].T  # (B, 1)


def init_params(key):
    # Mimic torch.nn.Linear default init: U(-1/sqrt(fan_in), 1/sqrt(fan_in)).
    # Weights stored PyTorch-style (out, in); biases as (out, 1) column vectors
    # so they broadcast over the lane (batch) axis inside the kernel.
    def linear(key, fan_in, fan_out):
        kw, kb = jax.random.split(key)
        bound = 1.0 / jnp.sqrt(fan_in)
        w = jax.random.uniform(kw, (fan_out, fan_in), jnp.float32, -bound, bound)
        b = jax.random.uniform(kb, (fan_out, 1), jnp.float32, -bound, bound)
        return w, b

    k1, k2, k3 = jax.random.split(key, 3)
    w1, b1 = linear(k1, 8, 6)
    w2, b2 = linear(k2, 6, 4)
    w3, b3 = linear(k3, 4, 1)
    return (w1, b1, w2, b2, w3, b3)


if __name__ == "__main__":
    key = jax.random.PRNGKey(0)
    k_param, k_x = jax.random.split(key)
    params = init_params(k_param)

    B = 256  # two batch tiles of TILE_B=128
    x = jax.random.normal(k_x, (B, 8), jnp.float32)

    out = mlp_forward(x, params)
    jax.block_until_ready(out)

    # Reference check in plain JAX (torch semantics: y = x @ W.T + b).
    w1, b1, w2, b2, w3, b3 = params
    ref = jax.nn.sigmoid(x @ w1.T + b1[:, 0])
    ref = jax.nn.sigmoid(ref @ w2.T + b2[:, 0])
    ref = jax.nn.sigmoid(ref @ w3.T + b3[:, 0])

    assert out.shape == (B, 1), out.shape
    assert jnp.allclose(out, ref, atol=1e-5), "mismatch vs reference"

    print("KERNEL_OK")
</pallas_src>

<mosaic_0001>
module attributes {stable_mosaic.version = 11 : i64} {
  func.func @mlp_kernel(%arg0: i32, %arg1: memref<8x128xf32, #tpu.memory_space<vmem>>, %arg2: memref<6x8xf32, #tpu.memory_space<vmem>>, %arg3: memref<6x1xf32, #tpu.memory_space<vmem>>, %arg4: memref<4x6xf32, #tpu.memory_space<vmem>>, %arg5: memref<4x1xf32, #tpu.memory_space<vmem>>, %arg6: memref<1x4xf32, #tpu.memory_space<vmem>>, %arg7: memref<1x1xf32, #tpu.memory_space<vmem>>, %arg8: memref<1x128xf32, #tpu.memory_space<vmem>>) attributes {dimension_semantics = [#tpu.dimension_semantics<parallel>], iteration_bounds = array<i64: 2>, scalar_prefetch = 0 : i64, scratch_operands = 0 : i64, tpu.core_type = #tpu.core_type<tc>, window_params = [{transform_indices = @transform_0, window_bounds = array<i64: 8, 128>}, {pipeline_mode = #tpu.pipeline_mode<synchronous>, transform_indices = @transform_1, window_bounds = array<i64: 6, 8>}, {pipeline_mode = #tpu.pipeline_mode<synchronous>, transform_indices = @transform_2, window_bounds = array<i64: 6, 1>}, {pipeline_mode = #tpu.pipeline_mode<synchronous>, transform_indices = @transform_3, window_bounds = array<i64: 4, 6>}, {pipeline_mode = #tpu.pipeline_mode<synchronous>, transform_indices = @transform_4, window_bounds = array<i64: 4, 1>}, {pipeline_mode = #tpu.pipeline_mode<synchronous>, transform_indices = @transform_5, window_bounds = array<i64: 1, 4>}, {pipeline_mode = #tpu.pipeline_mode<synchronous>, transform_indices = @transform_6, window_bounds = array<i64: 1, 1>}, {transform_indices = @transform_7, window_bounds = array<i64: 1, 128>}]} {
    %c0 = arith.constant 0 : index
    %c0_0 = arith.constant 0 : index
    %0 = vector.load %arg1[%c0, %c0_0] : memref<8x128xf32, #tpu.memory_space<vmem>>, vector<8x128xf32>
    %c0_1 = arith.constant 0 : index
    %c0_2 = arith.constant 0 : index
    %1 = vector.load %arg2[%c0_1, %c0_2] : memref<6x8xf32, #tpu.memory_space<vmem>>, vector<6x8xf32>
    %cst = arith.constant dense<0.000000e+00> : vector<6x128xf32>
    %2 = tpu.matmul %1, %0, %cst {dimension_numbers = #tpu.dot_dimension_numbers<[1], [0], [0], [1], [0, 0, 1, 1], [], []>} : vector<6x8xf32>, vector<8x128xf32>, vector<6x128xf32> -> vector<6x128xf32>
    %c0_3 = arith.constant 0 : index
    %c0_4 = arith.constant 0 : index
    %3 = vector.load %arg3[%c0_3, %c0_4] : memref<6x1xf32, #tpu.memory_space<vmem>>, vector<6x1xf32>
    %4 = vector.broadcast %3 : vector<6x1xf32> to vector<6x128xf32>
    %5 = arith.addf %2, %4 : vector<6x128xf32>
    %cst_5 = arith.constant 5.000000e-01 : f32
    %6 = vector.broadcast %cst_5 : f32 to vector<6x128xf32>
    %7 = arith.mulf %6, %5 : vector<6x128xf32>
    %8 = math.tanh %7 : vector<6x128xf32>
    %cst_6 = arith.constant 1.000000e+00 : f32
    %9 = vector.broadcast %cst_6 : f32 to vector<6x128xf32>
    %10 = arith.addf %8, %9 : vector<6x128xf32>
    %cst_7 = arith.constant 5.000000e-01 : f32
    %11 = vector.broadcast %cst_7 : f32 to vector<6x128xf32>
    %12 = arith.mulf %11, %10 : vector<6x128xf32>
    %c0_8 = arith.constant 0 : index
    %c0_9 = arith.constant 0 : index
    %13 = vector.load %arg4[%c0_8, %c0_9] : memref<4x6xf32, #tpu.memory_space<vmem>>, vector<4x6xf32>
    %cst_10 = arith.constant dense<0.000000e+00> : vector<4x128xf32>
    %14 = tpu.matmul %13, %12, %cst_10 {dimension_numbers = #tpu.dot_dimension_numbers<[1], [0], [0], [1], [0, 0, 1, 1], [], []>} : vector<4x6xf32>, vector<6x128xf32>, vector<4x128xf32> -> vector<4x128xf32>
    %c0_11 = arith.constant 0 : index
    %c0_12 = arith.constant 0 : index
    %15 = vector.load %arg5[%c0_11, %c0_12] : memref<4x1xf32, #tpu.memory_space<vmem>>, vector<4x1xf32>
    %16 = vector.broadcast %15 : vector<4x1xf32> to vector<4x128xf32>
    %17 = arith.addf %14, %16 : vector<4x128xf32>
    %cst_13 = arith.constant 5.000000e-01 : f32
    %18 = vector.broadcast %cst_13 : f32 to vector<4x128xf32>
    %19 = arith.mulf %18, %17 : vector<4x128xf32>
    %20 = math.tanh %19 : vector<4x128xf32>
    %cst_14 = arith.constant 1.000000e+00 : f32
    %21 = vector.broadcast %cst_14 : f32 to vector<4x128xf32>
    %22 = arith.addf %20, %21 : vector<4x128xf32>
    %cst_15 = arith.constant 5.000000e-01 : f32
    %23 = vector.broadcast %cst_15 : f32 to vector<4x128xf32>
    %24 = arith.mulf %23, %22 : vector<4x128xf32>
    %c0_16 = arith.constant 0 : index
    %c0_17 = arith.constant 0 : index
    %25 = vector.load %arg6[%c0_16, %c0_17] : memref<1x4xf32, #tpu.memory_space<vmem>>, vector<1x4xf32>
    %cst_18 = arith.constant dense<0.000000e+00> : vector<1x128xf32>
    %26 = tpu.matmul %25, %24, %cst_18 {dimension_numbers = #tpu.dot_dimension_numbers<[1], [0], [0], [1], [0, 0, 1, 1], [], []>} : vector<1x4xf32>, vector<4x128xf32>, vector<1x128xf32> -> vector<1x128xf32>
    %c0_19 = arith.constant 0 : index
    %c0_20 = arith.constant 0 : index
    %27 = vector.load %arg7[%c0_19, %c0_20] : memref<1x1xf32, #tpu.memory_space<vmem>>, vector<1x1xf32>
    %28 = vector.broadcast %27 : vector<1x1xf32> to vector<1x128xf32>
    %29 = arith.addf %26, %28 : vector<1x128xf32>
    %cst_21 = arith.constant 5.000000e-01 : f32
    %30 = vector.broadcast %cst_21 : f32 to vector<1x128xf32>
    %31 = arith.mulf %30, %29 : vector<1x128xf32>
    %32 = math.tanh %31 : vector<1x128xf32>
    %cst_22 = arith.constant 1.000000e+00 : f32
    %33 = vector.broadcast %cst_22 : f32 to vector<1x128xf32>
    %34 = arith.addf %32, %33 : vector<1x128xf32>
    %cst_23 = arith.constant 5.000000e-01 : f32
    %35 = vector.broadcast %cst_23 : f32 to vector<1x128xf32>
    %36 = arith.mulf %35, %34 : vector<1x128xf32>
    %c0_24 = arith.constant 0 : index
    %c0_25 = arith.constant 0 : index
    %37 = vector.load %arg8[%c0_24, %c0_25] : memref<1x128xf32, #tpu.memory_space<vmem>>, vector<1x128xf32>
    tpu.vector_store %arg8[%c0_24, %c0_25], %36 {strides = array<i32>} : memref<1x128xf32, #tpu.memory_space<vmem>>, vector<1x128xf32>,
    return
  }
  func.func @transform_0(%arg0: i32) -> (i32, i32) {
    %c0_i32 = arith.constant 0 : i32
    %c0_i32_0 = arith.constant 0 : i32
    return %c0_i32, %arg0 : i32, i32
  }
  func.func @transform_1(%arg0: i32) -> (i32, i32) {
    %c0_i32 = arith.constant 0 : i32
    %c0_i32_0 = arith.constant 0 : i32
    %c0_i32_1 = arith.constant 0 : i32
    return %c0_i32, %c0_i32_0 : i32, i32
  }
  func.func @transform_2(%arg0: i32) -> (i32, i32) {
    %c0_i32 = arith.constant 0 : i32
    %c0_i32_0 = arith.constant 0 : i32
    %c0_i32_1 = arith.constant 0 : i32
    return %c0_i32, %c0_i32_0 : i32, i32
  }
  func.func @transform_3(%arg0: i32) -> (i32, i32) {
    %c0_i32 = arith.constant 0 : i32
    %c0_i32_0 = arith.constant 0 : i32
    %c0_i32_1 = arith.constant 0 : i32
    return %c0_i32, %c0_i32_0 : i32, i32
  }
  func.func @transform_4(%arg0: i32) -> (i32, i32) {
    %c0_i32 = arith.constant 0 : i32
    %c0_i32_0 = arith.constant 0 : i32
    %c0_i32_1 = arith.constant 0 : i32
    return %c0_i32, %c0_i32_0 : i32, i32
  }
  func.func @transform_5(%arg0: i32) -> (i32, i32) {
    %c0_i32 = arith.constant 0 : i32
    %c0_i32_0 = arith.constant 0 : i32
    %c0_i32_1 = arith.constant 0 : i32
    return %c0_i32, %c0_i32_0 : i32, i32
  }
  func.func @transform_6(%arg0: i32) -> (i32, i32) {
    %c0_i32 = arith.constant 0 : i32
    %c0_i32_0 = arith.constant 0 : i32
    %c0_i32_1 = arith.constant 0 : i32
    return %c0_i32, %c0_i32_0 : i32, i32
  }
  func.func @transform_7(%arg0: i32) -> (i32, i32) {
    %c0_i32 = arith.constant 0 : i32
    %c0_i32_0 = arith.constant 0 : i32
    return %c0_i32, %arg0 : i32, i32
  }
}

</mosaic_0001>

<bundles_post_ra>
// kernel: tpu_custom_call.1
= control target key start
LH: loop header
LB: loop body
LE: loop exit
PB: predicated region body
PF: predicated region fallthrough
CT: control target
= control target key end

     0   :  { %s1514_s0 = inlined_call_operand.hbm [shape: f32[8,256], index: 0, kind: input, shape index: {}]   ;;  %s1515_s1 = inlined_call_operand.hbm [shape: f32[6,8], index: 1, kind: input, shape index: {}]   ;;  %s1516_s2 = inlined_call_operand.hbm [shape: f32[6,1], index: 2, kind: input, shape index: {}]   ;;  %s1517_s3 = inlined_call_operand.hbm [shape: f32[4,6], index: 3, kind: input, shape index: {}]   ;;  %s1518_s4 = inlined_call_operand.hbm [shape: f32[4,1], index: 4, kind: input, shape index: {}]   ;;  %s1519_s5 = inlined_call_operand.hbm [shape: f32[1,4], index: 5, kind: input, shape index: {}]   ;;  %s1520_s6 = inlined_call_operand.<no memory space> [shape: f32[1,1], index: 6, kind: input, shape index: {}]   ;;  %s1521_s7 = inlined_call_operand.hbm [shape: f32[1,256], index: 7, kind: output, shape index: {}]  }
   0x1   :  { %v12_v0 = vstv %s1520_s6 }
   0x2   :  { %13 = vst [vmem:[#allocation2] sm:$0x1] %v12_v0 }
   0x3   :  { %14 = vsyncpa [#allocation4], 0 }
   0x4   :  { %16 = vsyncpa [#allocation4 + $0x1], 0 }
   0x5   :  { %17 = vsyncpa [#allocation7], 0 }
   0x6   :  { %18 = vsyncpa [#allocation10], 0 }
   0x7   :  { %19 = vsyncpa [#allocation13], 0 }
   0x8   :  { %20 = vsyncpa [#allocation5], 0 }
   0x9   :  { %22 = vsyncpa [#allocation5 + $0x1], 0  ;;  %s1211_s26 = smov 0   ;;  %s1213_s27 = smov 0  }
   0xa   :  { %s1215_s28 = smov 0   ;;  %s1217_s29 = smov 0  }
   0xb LB: > { %s1158_s6 = smov [#allocation6]   ;;  %s1232_s8 = sadd.s32 4294967295, %s1156_s29   ;;  %s1156_s29 = sphi %s1217_s29, %s1546_s29   ;;  %s1152_s28 = sphi %s1215_s28, %s1545_s28   ;;  %s1148_s27 = sphi %s1213_s27, %s1544_s27   ;;  %s1144_s26 = sphi %s1211_s26, %s1543_s26  }
   0xc   : > { %s224_s30 = sshll.u32 %s1158_s6, 4  ;;  %p755_p0 = scmp.ge.s32.totalorder %s1156_s29, 1  ;;  %s1237_s30 = int_to_ptr.vmem [resolvable:$true] %s224_s30 }
   0xd   : > { %p1522_p1 = scmp.eq.s32.totalorder %s1232_s8, 0  ;;  %p211_p2 = scmp.lt.s32.totalorder %s1156_s29, 3 }
   0xe   : > { %s1159_s10 = smov [#allocation9]   ;;  %s1160_s12 = smov [#allocation8]  }
   0xf   : > { %p1239_p3 = pnand %p755_p0, %p211_p2  ;;  %s246_s11 = sshll.u32 %s1159_s10, 4  ;;  %s1246_s11 = int_to_ptr.vmem [resolvable:$true] %s246_s11 }
  0x10   : > { %s235_s13 = sshll.u32 %s1160_s12, 4  ;;  %s1161_s15 = smov [#allocation11]   ;;  %s1254_s13 = int_to_ptr.vmem [resolvable:$true] %s235_s13 }
  0x11   : > { %s1525_s9 = scalar_select %p1239_p3, 1, 0 }
  0x12   : > { %p824_p5 = pneg %p1239_p3  ;;  %s1256_s16 = sshll.u32 %s1161_s15, 4  ;;  %s258_s16 = int_to_ptr.vmem [resolvable:$true] %s1256_s16 }
  0x13   : > { %s908_s19 = scalar_lea.hbm %s1515_s1, 128 }
  0x14   : > { %p1250_p6 = pnand %p824_p5, %p1522_p1  ;;  %p909_p7 = scmp.ne.s32.totalorder %s1515_s1, %s908_s19 }
  0x15   : > { %p915_p11 = scmp.lt.u32.totalorder %s908_s19, %s1515_s1 }
  0x16   : > { %p1266_p8 = pneg %p1250_p6 }
  0x18   : > { %p911_p9 = pnand %p1266_p8, %p909_p7 }
  0x1a   : > { %p912_p10 = pneg %p911_p9 }
  0x1c   : > { %p917_p12 = pnand %p915_p11, %p912_p10 }
  0x1e   : > { %920 = shalt.err (!%p917_p12)
}
  0x1f   : > { %s921_s25 = scalar_lea.vmem %s1237_s30, 128  ;;  %p929_p5 = scmp.lt.s32.totalorder %s1237_s30, %s1237_s30 }
  0x20   : > { %p922_p13 = scmp.ne.s32.totalorder %s1237_s30, %s921_s25  ;;  %p930_p4 = scmp.lt.s32.totalorder %s921_s25, %s921_s25 }
  0x22   : > { %p924_p0 = pnand %p922_p13, %p1266_p8  ;;  %p931_p7 = por %p930_p4, %p929_p5 }
  0x24   : > { %p925_p2 = pneg %p924_p0 }
  0x26   : > { %p932_p9 = pnand %p931_p7, %p925_p2 }
  0x28   : > { %935 = shalt.err (!%p932_p9)
}
  0x29   : > { %827 = dma.hbm_to_vmem [thread:$0]  (!%p1250_p6), %s1515_s1, 128, %s1237_s30, [#allocation7]  }
  0x2a   : > { %s936_s17 = scalar_lea.hbm %s1517_s3, 64 }
  0x2b   : > { %p937_p10 = scmp.ne.s32.totalorder %s1517_s3, %s936_s17  ;;  %p943_p12 = scmp.lt.u32.totalorder %s936_s17, %s1517_s3 }
  0x2d   : > { %p939_p4 = pnand %p937_p10, %p1266_p8 }
  0x2f   : > { %p940_p11 = pneg %p939_p4 }
  0x31   : > { %p945_p13 = pnand %p943_p12, %p940_p11 }
  0x33   : > { %948 = shalt.err (!%p945_p13)
}
  0x34   : > { %s949_s30 = scalar_lea.vmem %s1246_s11, 64  ;;  %p957_p7 = scmp.lt.s32.totalorder %s1246_s11, %s1246_s11 }
  0x35   : > { %p950_p0 = scmp.ne.s32.totalorder %s1246_s11, %s949_s30  ;;  %p958_p9 = scmp.lt.s32.totalorder %s949_s30, %s949_s30 }
  0x37   : > { %p952_p2 = pnand %p950_p0, %p1266_p8  ;;  %p959_p10 = por %p958_p9, %p957_p7 }
  0x39   : > { %p953_p5 = pneg %p952_p2 }
  0x3b   : > { %p960_p4 = pnand %p959_p10, %p953_p5 }
  0x3d   : > { %963 = shalt.err (!%p960_p4)
}
  0x3e   : > { %833 = dma.hbm_to_vmem [thread:$0]  (!%p1250_p6), %s1517_s3, 64, %s1246_s11, [#allocation10]  }
  0x3f   : > { %s964_s10 = scalar_lea.hbm %s1516_s2, 128 }
  0x40   : > { %p965_p11 = scmp.ne.s32.totalorder %s1516_s2, %s964_s10  ;;  %p971_p0 = scmp.lt.u32.totalorder %s964_s10, %s1516_s2 }
  0x42   : > { %p967_p12 = pnand %p965_p11, %p1266_p8 }
  0x44   : > { %p968_p13 = pneg %p967_p12 }
  0x46   : > { %p973_p2 = pnand %p971_p0, %p968_p13 }
  0x48   : > { %976 = shalt.err (!%p973_p2)
}
  0x49   : > { %s977_s11 = scalar_lea.vmem %s1254_s13, 128  ;;  %p985_p10 = scmp.lt.s32.totalorder %s1254_s13, %s1254_s13 }
  0x4a   : > { %p978_p5 = scmp.ne.s32.totalorder %s1254_s13, %s977_s11  ;;  %p986_p4 = scmp.lt.s32.totalorder %s977_s11, %s977_s11 }
  0x4c   : > { %p980_p7 = pnand %p978_p5, %p1266_p8  ;;  %p987_p11 = por %p986_p4, %p985_p10 }
  0x4e   : > { %p981_p9 = pneg %p980_p7 }
  0x50   : > { %p988_p12 = pnand %p987_p11, %p981_p9 }
  0x52   : > { %991 = shalt.err (!%p988_p12)
}
  0x53   : > { %830 = dma.hbm_to_vmem [thread:$0]  (!%p1250_p6), %s1516_s2, 128, %s1254_s13, [#allocation7]  }
  0x54   : > { %s1162_s21 = smov [#allocation12]   ;;  %s992_s25 = scalar_lea.hbm %s1518_s4, 64 }
  0x55   : > { %s268_s30 = sshll.u32 %s1162_s21, 4  ;;  %p993_p13 = scmp.ne.s32.totalorder %s1518_s4, %s992_s25  ;;  %s269_s30 = int_to_ptr.vmem [resolvable:$true] %s268_s30 }
  0x56   : > { %p999_p5 = scmp.lt.u32.totalorder %s992_s25, %s1518_s4 }
  0x57   : > { %p995_p0 = pnand %p993_p13, %p1266_p8 }
  0x59   : > { %p996_p2 = pneg %p995_p0 }
  0x5b   : > { %p1001_p7 = pnand %p999_p5, %p996_p2 }
  0x5d   : > { %1004 = shalt.err (!%p1001_p7)
}
  0x5e   : > { %s1005_s13 = scalar_lea.vmem %s258_s16, 64  ;;  %p1013_p11 = scmp.lt.s32.totalorder %s258_s16, %s258_s16 }
  0x5f   : > { %p1006_p9 = scmp.ne.s32.totalorder %s258_s16, %s1005_s13  ;;  %p1014_p12 = scmp.lt.s32.totalorder %s1005_s13, %s1005_s13 }
  0x61   : > { %p1008_p10 = pnand %p1006_p9, %p1266_p8  ;;  %p1015_p1 = por %p1014_p12, %p1013_p11 }
  0x63   : > { %p1009_p4 = pneg %p1008_p10 }
  0x65   : > { %p1016_p3 = pnand %p1015_p1, %p1009_p4 }
  0x67   : > { %1019 = shalt.err (!%p1016_p3)
}
  0x68   : > { %836 = dma.hbm_to_vmem [thread:$0]  (!%p1250_p6), %s1518_s4, 64, %s258_s16, [#allocation10]  }
  0x69   : > { %s1020_s20 = scalar_lea.hbm %s1519_s5, 16 }
  0x6a   : > { %p1021_p13 = scmp.ne.s32.totalorder %s1519_s5, %s1020_s20  ;;  %p1027_p3 = scmp.lt.u32.totalorder %s1020_s20, %s1519_s5 }
  0x6c   : > { %p1023_p0 = pnand %p1021_p13, %p1266_p8 }
  0x6e   : > { %p1024_p1 = pneg %p1023_p0 }
  0x70   : > { %p1029_p2 = pnand %p1027_p3, %p1024_p1 }
  0x72   : > { %1032 = shalt.err (!%p1029_p2)
}
  0x73   : > { %s1033_s6 = scalar_lea.vmem %s269_s30, 16  ;;  %s1040_s16 = scalar_lea.vmem %s269_s30, 32 }
  0x74   : > { %p1034_p5 = scmp.ne.s32.totalorder %s269_s30, %s1033_s6  ;;  %p1041_p10 = scmp.lt.s32.totalorder %s269_s30, %s269_s30 }
  0x75   : > { %p1042_p4 = scmp.lt.s32.totalorder %s1040_s16, %s1033_s6 }
  0x76   : > { %p1036_p7 = pnand %p1034_p5, %p1266_p8 }
  0x77   : > { %p1043_p11 = por %p1042_p4, %p1041_p10 }
  0x78   : > { %p1037_p9 = pneg %p1036_p7 }
  0x7a   : > { %p1044_p12 = pnand %p1043_p11, %p1037_p9 }
  0x7c   : > { %1047 = shalt.err (!%p1044_p12)
}
  0x7d   : > { %839 = dma.hbm_to_vmem [thread:$0]  (!%p1250_p6), %s1519_s5, 16, %s269_s30, [#allocation13]  }
  0x7e   : > { %s754_s22 = sadd.s32 4294967294, %s1156_s29   ;;  %s1372_s14 = sadd.s32 1, %s1156_s29  }
  0x7f   : > { %s35_s15 = sadd.s32 1, %s1152_s28  ;;  %s32_s13 = ssub.s32 %s1156_s29, %s1372_s14 }
  0x80   : > { %p42_p8 = scmp.ne.s32.totalorder %s1152_s28, %s1148_s27  ;;  %p33_p13 = scmp.eq.s32.totalorder %s32_s13, 0 }
  0x81   : > { %p43_p0 = scmp.eq.s32.totalorder %s1156_s29, 0  ;;  %p48_p1 = scmp.ne.s32.totalorder %s1148_s27, %s1144_s26 }
  0x82   : > { %p198_p3 = scmp.eq.s32.totalorder %s1232_s8, 1  ;;  %p1528_p5 = scmp.eq.s32.totalorder %s1232_s8, 0 }
  0x83   : > { %s1384_s17 = scalar_select %p33_p13, %s1152_s28, %s35_s15  }
  0x84   : > { %p44_p2 = por %p43_p0, %p42_p8  ;;  %p1388_p7 = por %p1528_p5, %p48_p1 }
  0x85   : > { %p1392_p6 = por %p198_p3, %p42_p8  ;;  %p204_p9 = scmp.eq.s32.totalorder %s754_s22, 1 }
  0x86   : > { %p853_p10 = scmp.lt.s32.totalorder %s1156_s29, 2  ;;  %s282_s11 = sand.u32 1, %s1152_s28  }
  0x87   : > { %s1530_s30 = scalar_select %p1392_p6, 1, 0 }
  0x88   : > { %p1398_p4 = por %p204_p9, %p48_p1  ;;  %s762_s20 = sshll.u32 %s282_s11, 3 }
  0x89   : > { %s763_s21 = sshll.u32 %s1156_s29, 7  ;;  %s286_s6 = scalar_lea.vmem [#allocation3], %s762_s20 }
  0x8a   : > { %s1531_s19 = scalar_select %p1398_p4, 1, 0 }
  0x8b   : > { %s1406_s25 = scalar_lea.hbm %s1514_s0, %s763_s21  ;;  %s293_s16 = sshll.u32 %s286_s6, 4  ;;  %s1412_s16 = int_to_ptr.vmem [resolvable:$true] %s293_s16 }
  0x8c   : > { %p1408_p11 = pnand %p853_p10, %p44_p2  ;;  %s283_s12 = scalar_lea.sflag [#allocation4], %s282_s11 }
  0x8d   : > { %s1048_s22 = scalar_lea.hbm %s1406_s25, 128  ;;  %s1053_s20 = scalar_lea.hbm %s1514_s0, 256 }
  0x8e   : > { %p1049_p12 = scmp.ne.s32.totalorder %s1406_s25, %s1048_s22  ;;  %p1050_p8 = pneg %p1408_p11 }
  0x8f   : > { %p1054_p1 = scmp.lt.u32.totalorder %s1406_s25, %s1514_s0  ;;  %p1055_p3 = scmp.lt.u32.totalorder %s1053_s20, %s1048_s22 }
  0x90   : > { %p1051_p13 = pnand %p1050_p8, %p1049_p12  ;;  %p1057_p5 = scmp.lt.u32.totalorder %s1048_s22, %s1406_s25 }
  0x91   : > { %p1056_p2 = por %p1055_p3, %p1054_p1 }
  0x92   : > { %p1052_p0 = pneg %p1051_p13 }
  0x93   : > { %p1058_p9 = por %p1057_p5, %p1056_p2 }
  0x95   : > { %p1059_p10 = pnand %p1058_p9, %p1052_p0 }
  0x97   : > { %1062 = shalt.err (!%p1059_p10)
}
  0x98   : > { %s1063_s11 = scalar_lea.vmem %s1412_s16, 128  ;;  %s1163_s24 = smov [#allocation3]  }
  0x99   : > { %p1064_p12 = scmp.ne.s32.totalorder %s1412_s16, %s1063_s11  ;;  %s1068_s6 = sshll.u32 %s1163_s24, 4  ;;  %s1069_s6 = int_to_ptr.vmem [resolvable:$false] %s1068_s6 }
  0x9a   : > { %s1070_s15 = scalar_lea.vmem %s1069_s6, 256  ;;  %p1071_p6 = scmp.lt.s32.totalorder %s1412_s16, %s1069_s6 }
  0x9b   : > { %p1066_p13 = pnand %p1064_p12, %p1050_p8  ;;  %p1072_p1 = scmp.lt.s32.totalorder %s1070_s15, %s1063_s11 }
  0x9d   : > { %p1067_p4 = pneg %p1066_p13  ;;  %p1073_p3 = por %p1072_p1, %p1071_p6 }
  0x9f   : > { %p1074_p2 = pnand %p1073_p3, %p1067_p4 }
  0xa1   : > { %1077 = shalt.err (!%p1074_p2)
}
  0xa2   : > { %843 = dma.hbm_to_vmem [thread:$0]  (!%p1408_p11), %s1406_s25, 128, %s1412_s16, %s283_s12  }
  0xa3   : > { %p1533_p0 = scmp.ne.s32.totalorder %s1525_s9, 0 }
  0xa4   : > { %s1442_s22 = sand.u32 (!%p1533_p0), 1, %s1148_s27  }
  0xa5   : > { %302 = sbr.rel (%p1533_p0) target bundleno = 897 (0x381), region = 48  ;;  %s765_s13 = sshll.u32 (!%p1533_p0), %s1442_s22, 3 }
  0xa6   : > { %s305_s20 = scalar_lea.sflag (!%p1533_p0), [#allocation4], %s1442_s22  ;;  %s308_s21 = scalar_lea.vmem (!%p1533_p0), [#allocation3], %s765_s13 }
  0xac   : > { %1123 = dma.done.wait (%p1388_p7), %s305_s20, 128  }
  0xad   : > { %1125 = vsyncadd (%p1388_p7), %s305_s20, 4294967168  ;;  %p1534_p6 = scmp.eq.s32.totalorder %s1232_s8, 0 }
  0xaf   : > { %1127 = dma.done.wait (%p1534_p6), [#allocation7], 256   ;;  %p1535_p4 = pmov %p1534_p6 }
  0xb1   : > { %1129 = vsyncadd (%p1535_p4), [#allocation7], 4294967040  ;;  %p1536_p11 = pmov %p1535_p4 }
  0xb2   : > { %p1537_p8 = pmov %p1535_p4 }
  0xb3   : > { %1131 = dma.done.wait (%p1536_p11), [#allocation10], 128  }
  0xb4   : > { %1133 = vsyncadd (%p1537_p8), [#allocation10], 4294967168  ;;  %p1538_p5 = pmov %p1535_p4 }
  0xb5   : > { %p1539_p9 = pmov %p1535_p4 }
  0xb6   : > { %1135 = dma.done.wait (%p1538_p5), [#allocation13], 16  }
  0xb7   : > { %1137 = vsyncadd (%p1539_p9), [#allocation13], 4294967280  ;;  %v1164_v1 = vmov 0.0   ;;  %vm1165_vm0 = vmmov 0   ;;  %v1166_v2 = vmov 0   ;;  %vm366_vm1 = vcmask 64512  }
  0xb8   : > { %785 = vmatprep.subr.mxu0 %v1164_v1  ;;  %787 = vmatprep.mubr.msk.f32.mxu0 %vm1165_vm0, %v1164_v1  ;;  %v358_v3 = vld [vmem:[%s308_s21] sm:$0xff]  ;;  %v359_v4 = vld [vmem:[#allocation6] sm:$0x3f]  ;;  %v360_v5 = vld [vmem:[#allocation8] sm:$0x3f]  ;;  %vm455_vm2 = vcmask 1045504   ;;  %v540_v26 = vlaneseq }
  0xb9   : > { %900 = vset.pattern.permute.xlu0 %v1166_v2  ;;  %790 = vmatprep.subr.mxu1 %v1164_v1  ;;  %v445_v6 = vld [vmem:[#allocation11] sm:$0xf]  ;;  %v444_v15 = vld [vmem:[#allocation9] sm:$0xf]  ;;  %vm451_vm3 = vcmask 48128   ;;  %vm548_vm4 = vcmask 1043456  }
  0xba   : > { %792 = vmatprep.mubr.msk.f32.mxu1 %vm1165_vm0, %v1164_v1  ;;  %901 = vset.pattern.permute.xlu1 %v1166_v2  ;;  %v534_v16 = vld [vmem:[#allocation2] sm:$0x1]  ;;  %v533_v25 = vld [vmem:[#allocation12] sm:$0x1]  ;;  %vm544_vm5 = vcmask 31744   ;;  %v541_v27 = vshrl.u32 %v540_v26, 7 }
  0xbb   : > { %786 = vmatpush3.msra.mxu0 %v358_v3  ;;  %363 = vperm.xlu0 %900, %v360_v5   ;;  %s776_s9 = sshll.u32 %s1232_s8, 4  ;;  %s357_s18 = scalar_lea.vmem [#allocation14], %s1442_s22 }
  0xbc   : > { %788 = vmatmul.mubr.msk.f32.vlgmr.msra.gmra.mrb[0].mxu0 %vm366_vm1, %v359_v4  ;;  %795 = vmatprep.subr.mxu0 %v1164_v1  ;;  %v542_v28 = vsub.s32 0, %v541_v27  ;;  %s640_s25 = sshll.u32 %s357_s18, 4  ;;  %s1470_s12 = scalar_lea.hbm %s1521_s7, %s776_s9  ;;  %s1472_s25 = int_to_ptr.vmem [resolvable:$true] %s640_s25 }
  0xbd   : > { %797 = vmatprep.mubr.msk.f32.mxu0 %vm1165_vm0, %v1164_v1  ;;  %537 = vperm.xlu1 %901, %v534_v16   ;;  %s628_s23 = scalar_lea.sflag [#allocation5], %s1442_s22  ;;  %s1078_s11 = scalar_lea.vmem %s1472_s25, 16 }
  0xbe   : > { %p1079_p7 = scmp.ne.s32.totalorder %s1472_s25, %s1078_s11  ;;  %p1540_p10 = scmp.ne.s32.totalorder %s1530_s30, 0 }
  0xbf   : > { %448 = vperm.xlu0 %900, %v445_v6   ;;  %s1167_s8 = smov [#allocation14]  }
  0xc0   : > { %p1080_p12 = pnand %p1079_p7, %p1540_p10  ;;  %s1082_s24 = sshll.u32 %s1167_s8, 4  ;;  %s1083_s24 = int_to_ptr.vmem [resolvable:$false] %s1082_s24 }
  0xc1   : > { %s1084_s6 = scalar_lea.vmem %s1083_s24, 32  ;;  %p1085_p1 = scmp.lt.s32.totalorder %s1472_s25, %s1083_s24 }
  0xc2   : > { %p1081_p13 = pneg %p1080_p12  ;;  %p1086_p3 = scmp.lt.s32.totalorder %s1084_s6, %s1078_s11 }
  0xc4   : > { %p1087_p2 = por %p1086_p3, %p1085_p1 }
  0xc6   : > { %p1088_p0 = pnand %p1087_p2, %p1081_p13 }
 0x13a   : > { %v364_v7 = vpop.permute.xlu0 %363 }
 0x13c   : > { %v538_v29 = vpop.permute.xlu1 %537 }
 0x13d   : > { %v543_v30 = vrot.slane %v538_v29, %v542_v28 }
 0x13e   : > { %v449_v17 = vpop.permute.xlu0 %448 }
 0x18f   : > { %v436_v8 = vpop.f32.mrb[0].mxu0 }
 0x190   : > { %v437_v9 = vadd.f32 %v436_v8, %v364_v7  ;;  %v789_v10 = vpop.f32.mrb[1].mxu0 }
 0x192   : > { %v440_v11 = vmul.f32 0.5, %v437_v9 }
 0x194   : > { %902 = vtanh.f32 %v440_v11 }
 0x19e   : > { %v903_v12 = vpop.eup %902 }
 0x19f   : > { %v442_v13 = vadd.f32 1.0, %v903_v12 }
 0x1a1   : > { %v443_v14 = vmul.f32 0.5, %v442_v13 }
 0x1a3   : > { %791 = vmatpush3.msk.msra.mxu1 %vm455_vm2, %v443_v14 }
 0x1a4   : > { %793 = vmatmul.mubr.msk.f32.vlgmr.msra.gmra.mrb[0].mxu1 %vm451_vm3, %v444_v15 }
 0x277   : > { %v525_v18 = vpop.f32.mrb[0].mxu1 }
 0x278   : > { %v526_v19 = vadd.f32 %v525_v18, %v449_v17  ;;  %v794_v20 = vpop.f32.mrb[1].mxu1 }
 0x27a   : > { %v529_v21 = vmul.f32 0.5, %v526_v19 }
 0x27c   : > { %904 = vtanh.f32 %v529_v21 }
 0x286   : > { %v905_v22 = vpop.eup %904 }
 0x287   : > { %v531_v23 = vadd.f32 1.0, %v905_v22 }
 0x289   : > { %v532_v24 = vmul.f32 0.5, %v531_v23 }
 0x28b   : > { %796 = vmatpush3.msk.msra.mxu0 %vm548_vm4, %v532_v24 }
 0x28c   : > { %798 = vmatmul.mubr.msk.f32.vlgmr.msra.gmra.mrb[2].mxu0 %vm544_vm5, %v533_v25 }
 0x35f   : > { %v618_v31 = vpop.f32.mrb[2].mxu0 }
 0x360   : > { %v619_v32 = vadd.f32 %v618_v31, %v543_v30  ;;  %v799_v33 = vpop.f32.mrb[3].mxu0 }
 0x362   : > { %v622_v34 = vmul.f32 0.5, %v619_v32 }
 0x364   : > { %906 = vtanh.f32 %v622_v34 }
 0x36e   : > { %v907_v35 = vpop.eup %906 }
 0x36f   : > { %v624_v36 = vadd.f32 1.0, %v907_v35 }
 0x371   : > { %v625_v37 = vmul.f32 0.5, %v624_v36 }
 0x373   : > { %626 = vst [vmem:[%s357_s18] sm:$0x1] %v625_v37 }
 0x374   : > { %1091 = shalt.err (!%p1088_p0)
}
 0x375   : > { %s1092_s15 = scalar_lea.hbm %s1470_s12, 16  ;;  %s1096_s20 = scalar_lea.hbm %s1521_s7, 32 }
 0x376   : > { %p1093_p6 = scmp.ne.s32.totalorder %s1470_s12, %s1092_s15  ;;  %p1097_p8 = scmp.lt.u32.totalorder %s1470_s12, %s1521_s7 }
 0x377   : > { %p1098_p5 = scmp.lt.u32.totalorder %s1096_s20, %s1092_s15  ;;  %p1100_p7 = scmp.lt.u32.totalorder %s1092_s15, %s1470_s12 }
 0x378   : > { %p1094_p4 = pnand %p1093_p6, %p1540_p10 }
 0x379   : > { %p1099_p9 = por %p1098_p5, %p1097_p8 }
 0x37a   : > { %p1095_p11 = pneg %p1094_p4 }
 0x37b   : > { %p1101_p12 = por %p1100_p7, %p1099_p9 }
 0x37d   : > { %p1102_p13 = pnand %p1101_p12, %p1095_p11 }
 0x37f   : > { %1105 = shalt.err (!%p1102_p13)
}
 0x380   : > { %822 = dma.vmem_to_hbm [thread:$0]  (%p1540_p10), %s1472_s25, 16, %s1470_s12, %s628_s23  }
 0x381 PF: > { %s652_s18 = sand.u32 1, %s1144_s26   ;;  %p1541_p1 = scmp.ne.s32.totalorder %s1531_s19, 0 }
 0x382   : > { %p1542_p3 = scmp.ge.s32.totalorder %s1156_s29, 2  ;;  %s653_s16 = scalar_lea.sflag [#allocation5], %s652_s18 }
 0x384   : > { %p845_p2 = pnand %p1542_p3, %p1541_p1 }
 0x386   : > { %1139 = dma.done.wait (!%p845_p2), %s653_s16, 16  }
 0x387   : > { %1141 = vsyncadd (!%p845_p2), %s653_s16, 4294967280  ;;  %p25_p0 = scmp.ge.s32.totalorder %s1372_s14, 4   ;;  %s1543_s26 = smov %s1148_s27 }
 0x388   : > { %s1544_s27 = smov %s1152_s28  ;;  %s1545_s28 = smov %s1384_s17 }
 0x389   : > { %s1546_s29 = smov %s1372_s14  ;;  %27 = sbr.rel (!%p25_p0) target bundleno = 11 (0xb), region = 113 }
 0x390   :  { %657 = vsyncpa [#allocation4], 1 }
 0x391   :  { %659 = vsyncpa [#allocation4 + $0x1], 1 }
 0x392   :  { %660 = vsyncpa [#allocation7], 1 }
 0x393   :  { %661 = vsyncpa [#allocation10], 1 }
 0x394   :  { %662 = vsyncpa [#allocation13], 1 }
 0x395   :  { %663 = vsyncpa [#allocation5], 1 }
 0x396   :  { %665 = vsyncpa [#allocation5 + $0x1], 1 }

</bundles_post_ra>
